<compile_context>
chip_gen: v7x
topology: tpu7x:2x2x1
jax: 0.10.0
libtpu: 0.0.40
codegen_flags: <defaults>
</compile_context>

<pallas_src>
import jax
import jax.numpy as jnp
from jax.experimental import pallas as pl
from jax.experimental.pallas import tpu as pltpu

ORIG_DIM = 12
EMBED_DIM = 32
KSIZE = 11
PAD = 5
BN_EPS = 1e-5


def conv_emb_kernel(x_ref, w_ref, gamma_ref, beta_ref, o_ref, xp_ref, col_ref):
    """Fused Conv1d(k=11, pad=5) + BatchNorm1d(batch stats) + ReLU.

    x_ref     : (B, L, C_in)         unpadded input, channels last
    w_ref     : (K*C_in, C_out)      flattened conv weight (k major, c_in minor)
    gamma_ref : (1, C_out)           BN weight
    beta_ref  : (1, C_out)           BN bias
    o_ref     : (B, C_out, L)        PyTorch NCL output, lane-dense in L
    xp_ref    : (B, L+K-1, C_in)     VMEM scratch: zero-padded input
    col_ref   : (B, L, K*C_in)       VMEM scratch: im2col operand
    """
    B, L, Cin = x_ref.shape
    KC, Cout = w_ref.shape
    K = KC // Cin
    pad = (K - 1) // 2

    # --- zero-pad along length inside the kernel (no wrapper jnp.pad) --------
    xp_ref[...] = jnp.zeros_like(xp_ref)
    xp_ref[:, pad:pad + L, :] = x_ref[...]

    # --- im2col: col[b, l, k*Cin + ci] = xp[b, l + k, ci] --------------------
    for k in range(K):                               # static unroll, 11 taps
        col_ref[:, :, k * Cin:(k + 1) * Cin] = xp_ref[:, k:k + L, :]

    # --- single MXU contraction over the full K*Cin depth, f32 accumulate ----
    # Conv bias intentionally omitted: BN batch-mean subtraction cancels it.
    col = col_ref[...].reshape(B * L, KC)            # (B*L, K*Cin)
    conv = jnp.dot(col, w_ref[...], preferred_element_type=jnp.float32)  # (B*L, Cout)

    # --- BatchNorm1d, track_running_stats=False: batch stats, biased variance
    inv_n = 1.0 / float(B * L)
    mean = jnp.sum(conv, axis=0, keepdims=True) * inv_n                  # (1, Cout)
    centered = conv - mean
    var = jnp.sum(centered * centered, axis=0, keepdims=True) * inv_n    # (1, Cout)
    scale = jax.lax.rsqrt(var + BN_EPS) * gamma_ref[...]                 # gamma folded
    y = jnp.maximum(centered * scale + beta_ref[...], 0.0)               # ReLU

    # --- lane-dense (B, Cout, L) store: one 2-D transpose + per-batch slices -
    y_t = y.T                                                            # (Cout, B*L)
    for b in range(B):                                # static unroll, B is small
        o_ref[b] = y_t[:, b * L:(b + 1) * L].astype(o_ref.dtype)


@jax.jit
def conv_embedding(x, w, gamma, beta):
    """x: (B, L, orig_dim) -> (B, embed_dim, L), matching ConvEmbedding.forward."""
    B, L, Cin = x.shape
    K, _, Cout = w.shape
    w2d = w.reshape(K * Cin, Cout)                   # flat (k major, c_in minor)

    vmem = pl.BlockSpec(memory_space=pltpu.MemorySpace.VMEM)
    return pl.pallas_call(
        conv_emb_kernel,
        out_shape=jax.ShapeDtypeStruct((B, Cout, L), jnp.float32),
        in_specs=[vmem, vmem, vmem, vmem],
        out_specs=vmem,
        scratch_shapes=[
            pltpu.VMEM((B, L + K - 1, Cin), jnp.float32),   # padded input
            pltpu.VMEM((B, L, K * Cin), jnp.float32),       # im2col operand
        ],
    )(x, w2d, gamma.reshape(1, Cout), beta.reshape(1, Cout))


def reference(x, w, b, gamma, beta):
    """Pure-JAX reference reproducing the PyTorch forward (bias included)."""
    x_ncl = jnp.transpose(x, (0, 2, 1))              # (B, Cin, L)
    w_pt = jnp.transpose(w, (2, 1, 0))               # (Cout, Cin, K)
    conv = jax.lax.conv_general_dilated(
        x_ncl, w_pt, window_strides=(1,), padding=[(PAD, PAD)],
        dimension_numbers=("NCH", "OIH", "NCH"),
    ) + b.reshape(1, -1, 1)
    mean = jnp.mean(conv, axis=(0, 2), keepdims=True)
    var = jnp.mean((conv - mean) ** 2, axis=(0, 2), keepdims=True)
    y = (conv - mean) * jax.lax.rsqrt(var + BN_EPS)
    y = y * gamma.reshape(1, -1, 1) + beta.reshape(1, -1, 1)
    return jnp.maximum(y, 0.0)


if __name__ == "__main__":
    key = jax.random.PRNGKey(0)
    k_x, k_w, k_b = jax.random.split(key, 3)

    B, L = 2, 16
    x = jax.random.normal(k_x, (B, L, ORIG_DIM), dtype=jnp.float32)

    # Deterministic parameter init (shapes from nn.Conv1d / nn.BatchNorm1d).
    w = jax.random.normal(k_w, (KSIZE, ORIG_DIM, EMBED_DIM), dtype=jnp.float32) * 0.1
    b = jax.random.normal(k_b, (EMBED_DIM,), dtype=jnp.float32) * 0.1   # used by ref only
    gamma = jnp.ones((EMBED_DIM,), dtype=jnp.float32)                   # BN default init
    beta = jnp.zeros((EMBED_DIM,), dtype=jnp.float32)

    out = jax.block_until_ready(conv_embedding(x, w, gamma, beta))
    ref = jax.block_until_ready(reference(x, w, b, gamma, beta))

    assert out.shape == (B, EMBED_DIM, L), out.shape
    err = float(jnp.max(jnp.abs(out - ref)))
    assert jnp.allclose(out, ref, atol=1e-4, rtol=1e-4), err

    print("KERNEL_OK")
</pallas_src>

<mosaic_0001>
module attributes {stable_mosaic.version = 11 : i64} {
  func.func @conv_emb_kernel(%arg0: memref<2x16x12xf32, #tpu.memory_space<vmem>>, %arg1: memref<132x32xf32, #tpu.memory_space<vmem>>, %arg2: memref<1x32xf32, #tpu.memory_space<vmem>>, %arg3: memref<1x32xf32, #tpu.memory_space<vmem>>, %arg4: memref<2x32x16xf32, #tpu.memory_space<vmem>>, %arg5: memref<2x26x12xf32, #tpu.memory_space<vmem>>, %arg6: memref<2x16x132xf32, #tpu.memory_space<vmem>>) attributes {dimension_semantics = [], scalar_prefetch = 0 : i64, scratch_operands = 2 : i64, tpu.core_type = #tpu.core_type<tc>} {
    %cst = arith.constant 0.000000e+00 : f32
    %0 = vector.broadcast %cst : f32 to vector<2x26x12xf32>
    %c0 = arith.constant 0 : index
    %c0_0 = arith.constant 0 : index
    %c0_1 = arith.constant 0 : index
    %1 = vector.load %arg5[%c0, %c0_0, %c0_1] : memref<2x26x12xf32, #tpu.memory_space<vmem>>, vector<2x26x12xf32>
    tpu.vector_store %arg5[%c0, %c0_0, %c0_1], %0 {strides = array<i32>} : memref<2x26x12xf32, #tpu.memory_space<vmem>>, vector<2x26x12xf32>,
    %c0_2 = arith.constant 0 : index
    %c0_3 = arith.constant 0 : index
    %c0_4 = arith.constant 0 : index
    %2 = vector.load %arg0[%c0_2, %c0_3, %c0_4] : memref<2x16x12xf32, #tpu.memory_space<vmem>>, vector<2x16x12xf32>
    %c0_5 = arith.constant 0 : index
    %c5 = arith.constant 5 : index
    %c0_6 = arith.constant 0 : index
    %3 = vector.load %arg5[%c0_5, %c5, %c0_6] : memref<2x26x12xf32, #tpu.memory_space<vmem>>, vector<2x16x12xf32>
    tpu.vector_store %arg5[%c0_5, %c5, %c0_6], %2 {strides = array<i32>} : memref<2x26x12xf32, #tpu.memory_space<vmem>>, vector<2x16x12xf32>,
    %c0_7 = arith.constant 0 : index
    %c0_8 = arith.constant 0 : index
    %c0_9 = arith.constant 0 : index
    %4 = vector.load %arg5[%c0_7, %c0_8, %c0_9] : memref<2x26x12xf32, #tpu.memory_space<vmem>>, vector<2x16x12xf32>
    %c0_10 = arith.constant 0 : index
    %c0_11 = arith.constant 0 : index
    %c0_12 = arith.constant 0 : index
    %5 = vector.load %arg6[%c0_10, %c0_11, %c0_12] : memref<2x16x132xf32, #tpu.memory_space<vmem>>, vector<2x16x12xf32>
    tpu.vector_store %arg6[%c0_10, %c0_11, %c0_12], %4 {strides = array<i32>} : memref<2x16x132xf32, #tpu.memory_space<vmem>>, vector<2x16x12xf32>,
    %c0_13 = arith.constant 0 : index
    %c1 = arith.constant 1 : index
    %c0_14 = arith.constant 0 : index
    %6 = vector.load %arg5[%c0_13, %c1, %c0_14] : memref<2x26x12xf32, #tpu.memory_space<vmem>>, vector<2x16x12xf32>
    %c0_15 = arith.constant 0 : index
    %c0_16 = arith.constant 0 : index
    %c12 = arith.constant 12 : index
    %7 = vector.load %arg6[%c0_15, %c0_16, %c12] : memref<2x16x132xf32, #tpu.memory_space<vmem>>, vector<2x16x12xf32>
    tpu.vector_store %arg6[%c0_15, %c0_16, %c12], %6 {strides = array<i32>} : memref<2x16x132xf32, #tpu.memory_space<vmem>>, vector<2x16x12xf32>,
    %c0_17 = arith.constant 0 : index
    %c2 = arith.constant 2 : index
    %c0_18 = arith.constant 0 : index
    %8 = vector.load %arg5[%c0_17, %c2, %c0_18] : memref<2x26x12xf32, #tpu.memory_space<vmem>>, vector<2x16x12xf32>
    %c0_19 = arith.constant 0 : index
    %c0_20 = arith.constant 0 : index
    %c24 = arith.constant 24 : index
    %9 = vector.load %arg6[%c0_19, %c0_20, %c24] : memref<2x16x132xf32, #tpu.memory_space<vmem>>, vector<2x16x12xf32>
    tpu.vector_store %arg6[%c0_19, %c0_20, %c24], %8 {strides = array<i32>} : memref<2x16x132xf32, #tpu.memory_space<vmem>>, vector<2x16x12xf32>,
    %c0_21 = arith.constant 0 : index
    %c3 = arith.constant 3 : index
    %c0_22 = arith.constant 0 : index
    %10 = vector.load %arg5[%c0_21, %c3, %c0_22] : memref<2x26x12xf32, #tpu.memory_space<vmem>>, vector<2x16x12xf32>
    %c0_23 = arith.constant 0 : index
    %c0_24 = arith.constant 0 : index
    %c36 = arith.constant 36 : index
    %11 = vector.load %arg6[%c0_23, %c0_24, %c36] : memref<2x16x132xf32, #tpu.memory_space<vmem>>, vector<2x16x12xf32>
    tpu.vector_store %arg6[%c0_23, %c0_24, %c36], %10 {strides = array<i32>} : memref<2x16x132xf32, #tpu.memory_space<vmem>>, vector<2x16x12xf32>,
    %c0_25 = arith.constant 0 : index
    %c4 = arith.constant 4 : index
    %c0_26 = arith.constant 0 : index
    %12 = vector.load %arg5[%c0_25, %c4, %c0_26] : memref<2x26x12xf32, #tpu.memory_space<vmem>>, vector<2x16x12xf32>
    %c0_27 = arith.constant 0 : index
    %c0_28 = arith.constant 0 : index
    %c48 = arith.constant 48 : index
    %13 = vector.load %arg6[%c0_27, %c0_28, %c48] : memref<2x16x132xf32, #tpu.memory_space<vmem>>, vector<2x16x12xf32>
    tpu.vector_store %arg6[%c0_27, %c0_28, %c48], %12 {strides = array<i32>} : memref<2x16x132xf32, #tpu.memory_space<vmem>>, vector<2x16x12xf32>,
    %c0_29 = arith.constant 0 : index
    %c5_30 = arith.constant 5 : index
    %c0_31 = arith.constant 0 : index
    %14 = vector.load %arg5[%c0_29, %c5_30, %c0_31] : memref<2x26x12xf32, #tpu.memory_space<vmem>>, vector<2x16x12xf32>
    %c0_32 = arith.constant 0 : index
    %c0_33 = arith.constant 0 : index
    %c60 = arith.constant 60 : index
    %15 = vector.load %arg6[%c0_32, %c0_33, %c60] : memref<2x16x132xf32, #tpu.memory_space<vmem>>, vector<2x16x12xf32>
    tpu.vector_store %arg6[%c0_32, %c0_33, %c60], %14 {strides = array<i32>} : memref<2x16x132xf32, #tpu.memory_space<vmem>>, vector<2x16x12xf32>,
    %c0_34 = arith.constant 0 : index
    %c6 = arith.constant 6 : index
    %c0_35 = arith.constant 0 : index
    %16 = vector.load %arg5[%c0_34, %c6, %c0_35] : memref<2x26x12xf32, #tpu.memory_space<vmem>>, vector<2x16x12xf32>
    %c0_36 = arith.constant 0 : index
    %c0_37 = arith.constant 0 : index
    %c72 = arith.constant 72 : index
    %17 = vector.load %arg6[%c0_36, %c0_37, %c72] : memref<2x16x132xf32, #tpu.memory_space<vmem>>, vector<2x16x12xf32>
    tpu.vector_store %arg6[%c0_36, %c0_37, %c72], %16 {strides = array<i32>} : memref<2x16x132xf32, #tpu.memory_space<vmem>>, vector<2x16x12xf32>,
    %c0_38 = arith.constant 0 : index
    %c7 = arith.constant 7 : index
    %c0_39 = arith.constant 0 : index
    %18 = vector.load %arg5[%c0_38, %c7, %c0_39] : memref<2x26x12xf32, #tpu.memory_space<vmem>>, vector<2x16x12xf32>
    %c0_40 = arith.constant 0 : index
    %c0_41 = arith.constant 0 : index
    %c84 = arith.constant 84 : index
    %19 = vector.load %arg6[%c0_40, %c0_41, %c84] : memref<2x16x132xf32, #tpu.memory_space<vmem>>, vector<2x16x12xf32>
    tpu.vector_store %arg6[%c0_40, %c0_41, %c84], %18 {strides = array<i32>} : memref<2x16x132xf32, #tpu.memory_space<vmem>>, vector<2x16x12xf32>,
    %c0_42 = arith.constant 0 : index
    %c8 = arith.constant 8 : index
    %c0_43 = arith.constant 0 : index
    %20 = vector.load %arg5[%c0_42, %c8, %c0_43] : memref<2x26x12xf32, #tpu.memory_space<vmem>>, vector<2x16x12xf32>
    %c0_44 = arith.constant 0 : index
    %c0_45 = arith.constant 0 : index
    %c96 = arith.constant 96 : index
    %21 = vector.load %arg6[%c0_44, %c0_45, %c96] : memref<2x16x132xf32, #tpu.memory_space<vmem>>, vector<2x16x12xf32>
    tpu.vector_store %arg6[%c0_44, %c0_45, %c96], %20 {strides = array<i32>} : memref<2x16x132xf32, #tpu.memory_space<vmem>>, vector<2x16x12xf32>,
    %c0_46 = arith.constant 0 : index
    %c9 = arith.constant 9 : index
    %c0_47 = arith.constant 0 : index
    %22 = vector.load %arg5[%c0_46, %c9, %c0_47] : memref<2x26x12xf32, #tpu.memory_space<vmem>>, vector<2x16x12xf32>
    %c0_48 = arith.constant 0 : index
    %c0_49 = arith.constant 0 : index
    %c108 = arith.constant 108 : index
    %23 = vector.load %arg6[%c0_48, %c0_49, %c108] : memref<2x16x132xf32, #tpu.memory_space<vmem>>, vector<2x16x12xf32>
    tpu.vector_store %arg6[%c0_48, %c0_49, %c108], %22 {strides = array<i32>} : memref<2x16x132xf32, #tpu.memory_space<vmem>>, vector<2x16x12xf32>,
    %c0_50 = arith.constant 0 : index
    %c10 = arith.constant 10 : index
    %c0_51 = arith.constant 0 : index
    %24 = vector.load %arg5[%c0_50, %c10, %c0_51] : memref<2x26x12xf32, #tpu.memory_space<vmem>>, vector<2x16x12xf32>
    %c0_52 = arith.constant 0 : index
    %c0_53 = arith.constant 0 : index
    %c120 = arith.constant 120 : index
    %25 = vector.load %arg6[%c0_52, %c0_53, %c120] : memref<2x16x132xf32, #tpu.memory_space<vmem>>, vector<2x16x12xf32>
    tpu.vector_store %arg6[%c0_52, %c0_53, %c120], %24 {strides = array<i32>} : memref<2x16x132xf32, #tpu.memory_space<vmem>>, vector<2x16x12xf32>,
    %c0_54 = arith.constant 0 : index
    %c0_55 = arith.constant 0 : index
    %c0_56 = arith.constant 0 : index
    %26 = vector.load %arg6[%c0_54, %c0_55, %c0_56] : memref<2x16x132xf32, #tpu.memory_space<vmem>>, vector<2x16x132xf32>
    %27 = vector.shape_cast %26 : vector<2x16x132xf32> to vector<32x132xf32>
    %c0_57 = arith.constant 0 : index
    %c0_58 = arith.constant 0 : index
    %28 = vector.load %arg1[%c0_57, %c0_58] : memref<132x32xf32, #tpu.memory_space<vmem>>, vector<132x32xf32>
    %cst_59 = arith.constant dense<0.000000e+00> : vector<32x32xf32>
    %29 = tpu.matmul %27, %28, %cst_59 {dimension_numbers = #tpu.dot_dimension_numbers<[1], [0], [0], [1], [0, 0, 1, 1], [], []>} : vector<32x132xf32>, vector<132x32xf32>, vector<32x32xf32> -> vector<32x32xf32>
    %cst_60 = arith.constant dense<0.000000e+00> : vector<32xf32>
    %30 = vector.multi_reduction <add>, %29, %cst_60 [0] : vector<32x32xf32> to vector<32xf32>
    %31 = vector.shape_cast %30 : vector<32xf32> to vector<1x32xf32>
    %cst_61 = arith.constant 3.125000e-02 : f32
    %32 = vector.broadcast %cst_61 : f32 to vector<1x32xf32>
    %33 = arith.mulf %31, %32 : vector<1x32xf32>
    %34 = vector.broadcast %33 : vector<1x32xf32> to vector<32x32xf32>
    %35 = arith.subf %29, %34 : vector<32x32xf32>
    %36 = arith.mulf %35, %35 : vector<32x32xf32>
    %cst_62 = arith.constant dense<0.000000e+00> : vector<32xf32>
    %37 = vector.multi_reduction <add>, %36, %cst_62 [0] : vector<32x32xf32> to vector<32xf32>
    %38 = vector.shape_cast %37 : vector<32xf32> to vector<1x32xf32>
    %cst_63 = arith.constant 3.125000e-02 : f32
    %39 = vector.broadcast %cst_63 : f32 to vector<1x32xf32>
    %40 = arith.mulf %38, %39 : vector<1x32xf32>
    %cst_64 = arith.constant 9.99999974E-6 : f32
    %41 = vector.broadcast %cst_64 : f32 to vector<1x32xf32>
    %42 = arith.addf %40, %41 : vector<1x32xf32>
    %43 = math.rsqrt %42 : vector<1x32xf32>
    %c0_65 = arith.constant 0 : index
    %c0_66 = arith.constant 0 : index
    %44 = vector.load %arg2[%c0_65, %c0_66] : memref<1x32xf32, #tpu.memory_space<vmem>>, vector<1x32xf32>
    %45 = arith.mulf %43, %44 : vector<1x32xf32>
    %46 = vector.broadcast %45 : vector<1x32xf32> to vector<32x32xf32>
    %47 = arith.mulf %35, %46 : vector<32x32xf32>
    %c0_67 = arith.constant 0 : index
    %c0_68 = arith.constant 0 : index
    %48 = vector.load %arg3[%c0_67, %c0_68] : memref<1x32xf32, #tpu.memory_space<vmem>>, vector<1x32xf32>
    %49 = vector.broadcast %48 : vector<1x32xf32> to vector<32x32xf32>
    %50 = arith.addf %47, %49 : vector<32x32xf32>
    %cst_69 = arith.constant 0.000000e+00 : f32
    %51 = vector.broadcast %cst_69 : f32 to vector<32x32xf32>
    %52 = arith.maximumf %50, %51 : vector<32x32xf32>
    %53 = tpu.transpose %52, [1, 0] : vector<32x32xf32> -> vector<32x32xf32>
    %54 = vector.extract_strided_slice %53 {offsets = [0, 0], sizes = [32, 16], strides = [1, 1]} : vector<32x32xf32> to vector<32x16xf32>
    %c0_70 = arith.constant 0 : index
    %c0_71 = arith.constant 0 : index
    %c0_72 = arith.constant 0 : index
    %55 = vector.load %arg4[%c0_70, %c0_71, %c0_72] : memref<2x32x16xf32, #tpu.memory_space<vmem>>, vector<1x32x16xf32>
    %56 = vector.shape_cast %55 : vector<1x32x16xf32> to vector<32x16xf32>
    %57 = vector.shape_cast %54 : vector<32x16xf32> to vector<1x32x16xf32>
    tpu.vector_store %arg4[%c0_70, %c0_71, %c0_72], %57 {strides = array<i32>} : memref<2x32x16xf32, #tpu.memory_space<vmem>>, vector<1x32x16xf32>,
    %58 = vector.extract_strided_slice %53 {offsets = [0, 16], sizes = [32, 16], strides = [1, 1]} : vector<32x32xf32> to vector<32x16xf32>
    %c1_73 = arith.constant 1 : index
    %c0_74 = arith.constant 0 : index
    %c0_75 = arith.constant 0 : index
    %59 = vector.load %arg4[%c1_73, %c0_74, %c0_75] : memref<2x32x16xf32, #tpu.memory_space<vmem>>, vector<1x32x16xf32>
    %60 = vector.shape_cast %59 : vector<1x32x16xf32> to vector<32x16xf32>
    %61 = vector.shape_cast %58 : vector<32x16xf32> to vector<1x32x16xf32>
    tpu.vector_store %arg4[%c1_73, %c0_74, %c0_75], %61 {strides = array<i32>} : memref<2x32x16xf32, #tpu.memory_space<vmem>>, vector<1x32x16xf32>,
    return
  }
}

</mosaic_0001>

<bundles_post_ra>
// kernel: conv_embedding.1
= control target key start
LH: loop header
LB: loop body
LE: loop exit
PB: predicated region body
PF: predicated region fallthrough
CT: control target
= control target key end

     0   :  { %vm17_vm0 = vcmask 97280   ;;  %vm21_vm1 = vcmask 91136   ;;  %v617_v0 = vmov 0.0   ;;  %s618_s23 = smov 36   ;;  %s619_s24 = smov 12   ;;  %v620_v9 = vmov 0.0|0.0   ;;  %s908_s0 = inlined_call_operand.vmem [shape: f32[2,16,12], index: 0, kind: input, shape index: {}]   ;;  %s909_s1 = inlined_call_operand.vmem [shape: f32[132,32], index: 1, kind: input, shape index: {}]   ;;  %s910_s2 = inlined_call_operand.vmem [shape: f32[1,32], index: 2, kind: input, shape index: {}]   ;;  %s911_s3 = inlined_call_operand.vmem [shape: f32[1,32], index: 3, kind: input, shape index: {}]   ;;  %s912_s4 = inlined_call_operand.vmem [shape: f32[2,32,16], index: 4, kind: output, shape index: {}]  }
   0x1   :  { %18 = vst.msk [vmem:[#allocation2] sm:$0xff] %vm17_vm0, %v617_v0  ;;  %19 = vst.msk [vmem:[#allocation2 + $0x8] sm:$0xff] %vm17_vm0, %v617_v0  ;;  %v27_v1 = vld [vmem:[%s908_s0] sm:$0xff]  ;;  %v29_v2 = vld [vmem:[%s908_s0 + $0x10] sm:$0xff]  ;;  %560 = vmatprep.subr.bf16.mxu0 %v620_v9  ;;  %584 = vmatprep.subr.bf16.mxu1 %v620_v9  ;;  %s622_s25 = smov 24   ;;  %s623_s28 = smov 60  }
   0x2   :  { %20 = vst.msk [vmem:[#allocation2 + $0x10] sm:$0xff] %vm17_vm0, %v617_v0  ;;  %23 = vst.msk [vmem:[#allocation2 + $0x20] sm:$0xff] %vm17_vm0, %v617_v0  ;;  %v28_v3 = vld [vmem:[%s908_s0 + $0x8] sm:$0xff]  ;;  %v30_v4 = vld [vmem:[%s908_s0 + $0x18] sm:$0xff]  ;;  %s621_s0 = smov 48   ;;  %s624_s9 = smov 72  }
   0x3   :  { %24 = vst.msk [vmem:[#allocation2 + $0x28] sm:$0xff] %vm17_vm0, %v617_v0  ;;  %25 = vst.msk [vmem:[#allocation2 + $0x30] sm:$0xff] %vm17_vm0, %v617_v0  ;;  %v306_v18 = vld [vmem:[%s909_s1] sm:$0xff]  ;;  %v307_v19 = vld [vmem:[%s909_s1 + $0x8] sm:$0xff]  ;;  %s625_s18 = smov 84   ;;  %s626_s26 = smov 96  }
   0x4   :  { %22 = vst.msk [vmem:[#allocation2 + $0x18] sm:$0x3] %vm21_vm1, %v617_v0  ;;  %26 = vst.msk [vmem:[#allocation2 + $0x38] sm:$0x3] %vm21_vm1, %v617_v0  ;;  %v308_v20 = vld [vmem:[%s909_s1 + $0x10] sm:$0xff]  ;;  %v561_v23 = vpack.c.bf16 %v307_v19, %v306_v18  ;;  %v309_v24 = vld [vmem:[%s909_s1 + $0x18] sm:$0xff] }
   0x5   :  { %31 = vst.msk [vmem:[#allocation2 + $0x5] sm:$0xff] %vm17_vm0, %v27_v1  ;;  %33 = vst.msk [vmem:[#allocation2 + $0x25] sm:$0xff] %vm17_vm0, %v29_v2  ;;  %v564_v25 = vpack.c.bf16 %v309_v24, %v308_v20  ;;  %v310_v26 = vld [vmem:[%s909_s1 + $0x20] sm:$0xff]  ;;  %v311_v27 = vld [vmem:[%s909_s1 + $0x28] sm:$0xff]  ;;  %s627_s11 = smov 108   ;;  %s628_s15 = smov 120  }
   0x6   :  { %32 = vst.msk [vmem:[#allocation2 + $0xd] sm:$0xff] %vm17_vm0, %v28_v3  ;;  %34 = vst.msk [vmem:[#allocation2 + $0x2d] sm:$0xff] %vm17_vm0, %v30_v4  ;;  %562 = vmatpush1.bf16.msra.mxu0 %v561_v23  ;;  %593 = vmatpush1.bf16.msra.mxu1 %v561_v23  ;;  %v567_v30 = vpack.c.bf16 %v311_v27, %v310_v26  ;;  %v312_v31 = vld [vmem:[%s909_s1 + $0x30] sm:$0xff]  ;;  %v313_v32 = vld [vmem:[%s909_s1 + $0x38] sm:$0xff]  ;;  %vm335_vm2 = vcmask 1043456   ;;  %vm63_vm3 = vcmask 195680  }
   0x7   :  { %563 = vmatprep.subr.bf16.mxu0 %v620_v9  ;;  %585 = vmatprep.subr.bf16.mxu1 %v620_v9  ;;  %v570_v35 = vpack.c.bf16 %v313_v32, %v312_v31  ;;  %v314_v36 = vld [vmem:[%s909_s1 + $0x40] sm:$0xff]  ;;  %v315_v37 = vld [vmem:[%s909_s1 + $0x48] sm:$0xff]  ;;  %v316_v40 = vld [vmem:[%s909_s1 + $0x50] sm:$0xff]  ;;  %vm88_vm4 = vcmask 294080   ;;  %vm113_vm5 = vcmask 392480   ;;  %vm138_vm6 = vcmask 490880  }
   0x8   :  { %v573_v39 = vpack.c.bf16 %v315_v37, %v314_v36  ;;  %v317_v41 = vld [vmem:[%s909_s1 + $0x58] sm:$0xff]  ;;  %v318_v45 = vld [vmem:[%s909_s1 + $0x60] sm:$0xff]  ;;  %v319_v46 = vld [vmem:[%s909_s1 + $0x68] sm:$0xff]  ;;  %vm163_vm7 = vcmask 589280   ;;  %vm188_vm8 = vcmask 687680   ;;  %vm213_vm9 = vcmask 786080  }
   0x9   :  { %v576_v44 = vpack.c.bf16 %v317_v41, %v316_v40  ;;  %v579_v48 = vpack.c.bf16 %v319_v46, %v318_v45  ;;  %v320_v49 = vld [vmem:[%s909_s1 + $0x70] sm:$0xff]  ;;  %v321_v50 = vld [vmem:[%s909_s1 + $0x78] sm:$0xff]  ;;  %v322_v55 = vld [vmem:[%s909_s1 + $0x80] sm:$0xf]  ;;  %vm238_vm10 = vcmask 884480   ;;  %vm263_vm11 = vcmask 982880  }
   0xa   :  { %565 = vmatpush1.bf16.msra.mxu0 %v564_v25  ;;  %594 = vmatpush1.bf16.msra.mxu1 %v564_v25  ;;  %v582_v52 = vpack.c.bf16 %v321_v50, %v320_v49  ;;  %vm288_vm12 = vcmask 1048512   ;;  %vm290_vm13 = vcmask 31744   ;;  %vm424_vm14 = vcmask 261120  }
   0xb   :  { %566 = vmatprep.subr.bf16.mxu0 %v620_v9  ;;  %586 = vmatprep.subr.bf16.mxu1 %v620_v9  ;;  %vm520_vm15 = vcmask 130048  }
   0xc   :  { %v93_v5 = vld [vmem:[#allocation2 + $0x3] sm:$0xff] }
   0xd   :  { %v43_v6 = vld [vmem:[#allocation2 + $0x1] sm:$0xff]  ;;  %101 = vrot.lane.b32.xlu1 %v93_v5, %s618_s23  ;;  %v695_v12 = vld [vmem:[#allocation2 + $0x9] sm:$0xff]  ;;  %v244_v61 = vld [vmem:[#allocation2 + $0x11] sm:$0xff] }
   0xe   :  { %51 = vrot.lane.b32.xlu0 %v43_v6, %s619_s24  ;;  %v118_v7 = vld [vmem:[#allocation2 + $0x4] sm:$0xff]  ;;  %v119_v33 = vld [vmem:[#allocation2 + $0xc] sm:$0xff]  ;;  %568 = vmatpush1.bf16.msra.mxu0 %v567_v30 }
   0xf   :  { %v68_v8 = vld [vmem:[#allocation2 + $0x2] sm:$0xff]  ;;  %v704_v14 = vld [vmem:[#allocation2 + $0xa] sm:$0xff]  ;;  %595 = vmatpush1.bf16.msra.mxu1 %v567_v30  ;;  %569 = vmatprep.subr.bf16.mxu0 %v620_v9  ;;  %v269_v63 = vld [vmem:[#allocation2 + $0x12] sm:$0xff] }
  0x10   :  { %v689_v10 = vld [vmem:[#allocation2 + $0x8] sm:$0xff]  ;;  %v35_v16 = vld [vmem:[#allocation2] sm:$0xff]  ;;  %587 = vmatprep.subr.bf16.mxu1 %v620_v9  ;;  %v219_v60 = vld [vmem:[#allocation2 + $0x10] sm:$0xff] }
  0x11   :  { %126 = vrot.lane.b32.xlu1 %v118_v7, %s621_s0  ;;  %40 = vst.msk [vmem:[#allocation3 + $0x10] sm:$0xff] %vm17_vm0, %v689_v10  ;;  %v45_v11 = vld [vmem:[#allocation2 + $0x21] sm:$0xff]  ;;  %39 = vst.msk [vmem:[#allocation3] sm:$0xff] %vm17_vm0, %v35_v16  ;;  %v94_v29 = vld [vmem:[#allocation2 + $0xb] sm:$0xff] }
  0x12   :  { %76 = vrot.lane.b32.xlu0 %v68_v8, %s622_s25  ;;  %v697_v13 = vld [vmem:[#allocation2 + $0x28] sm:$0xff]  ;;  %v37_v17 = vld [vmem:[#allocation2 + $0x20] sm:$0xff]  ;;  %571 = vmatpush1.bf16.msra.mxu0 %v570_v35  ;;  %v221_v1 = vld [vmem:[#allocation2 + $0x30] sm:$0xff] }
  0x13   :  { %42 = vst.msk [vmem:[#allocation3 + $0x30] sm:$0xff] %vm17_vm0, %v697_v13  ;;  %v143_v15 = vld [vmem:[#allocation2 + $0x5] sm:$0xff]  ;;  %41 = vst.msk [vmem:[#allocation3 + $0x20] sm:$0xff] %vm17_vm0, %v37_v17  ;;  %596 = vmatpush1.bf16.msra.mxu1 %v570_v35  ;;  %v144_v42 = vld [vmem:[#allocation2 + $0xd] sm:$0xff]  ;;  %572 = vmatprep.subr.bf16.mxu0 %v620_v9 }
  0x14   :  { %v168_v21 = vld [vmem:[#allocation2 + $0x6] sm:$0xff]  ;;  %588 = vmatprep.subr.bf16.mxu1 %v620_v9  ;;  %v169_v54 = vld [vmem:[#allocation2 + $0xe] sm:$0xff] }
  0x15   :  { %55 = vrot.lane.b32.xlu1 %v45_v11, %s619_s24  ;;  %v70_v22 = vld [vmem:[#allocation2 + $0x22] sm:$0xff]  ;;  %v71_v51 = vld [vmem:[#allocation2 + $0x2a] sm:$0xff]  ;;  %v271_v3 = vld [vmem:[#allocation2 + $0x32] sm:$0xff] }
  0x16   :  { %53 = vrot.lane.b32.xlu0 %v695_v12, %s619_s24  ;;  %v95_v28 = vld [vmem:[#allocation2 + $0x23] sm:$0xff]  ;;  %574 = vmatpush1.bf16.msra.mxu0 %v573_v39  ;;  %v194_v56 = vld [vmem:[#allocation2 + $0xf] sm:$0xff] }
  0x17   :  { %v193_v34 = vld [vmem:[#allocation2 + $0x7] sm:$0xff]  ;;  %597 = vmatpush1.bf16.msra.mxu1 %v573_v39  ;;  %575 = vmatprep.subr.bf16.mxu0 %v620_v9  ;;  %v196_v2 = vld [vmem:[#allocation2 + $0x2f] sm:$0xff] }
  0x18   :  { %v120_v38 = vld [vmem:[#allocation2 + $0x24] sm:$0xff]  ;;  %589 = vmatprep.subr.bf16.mxu1 %v620_v9  ;;  %v121_v58 = vld [vmem:[#allocation2 + $0x2c] sm:$0xff] }
  0x19   :  { %78 = vrot.lane.b32.xlu1 %v704_v14, %s622_s25  ;;  %v46_v43 = vld [vmem:[#allocation2 + $0x29] sm:$0xff]  ;;  %v246_v4 = vld [vmem:[#allocation2 + $0x31] sm:$0xff] }
  0x1a   :  { %151 = vrot.lane.b32.xlu0 %v143_v15, %s623_s28  ;;  %v145_v47 = vld [vmem:[#allocation2 + $0x25] sm:$0xff]  ;;  %577 = vmatpush1.bf16.msra.mxu0 %v576_v44  ;;  %v146_v62 = vld [vmem:[#allocation2 + $0x2d] sm:$0xff] }
  0x1b   :  { %598 = vmatpush1.bf16.msra.mxu1 %v576_v44  ;;  %578 = vmatprep.subr.bf16.mxu0 %v620_v9  ;;  %v170_v53 = vld [vmem:[#allocation2 + $0x26] sm:$0xff] }
  0x1c   :  { %590 = vmatprep.subr.bf16.mxu1 %v620_v9  ;;  %v96_v57 = vld [vmem:[#allocation2 + $0x2b] sm:$0xff] }
  0x1d   :  { %176 = vrot.lane.b32.xlu1 %v168_v21, %s624_s9  ;;  %v195_v59 = vld [vmem:[#allocation2 + $0x27] sm:$0xff] }
  0x1e   :  { %80 = vrot.lane.b32.xlu0 %v70_v22, %s622_s25  ;;  %580 = vmatpush1.bf16.msra.mxu0 %v579_v48 }
  0x1f   :  { %599 = vmatpush1.bf16.msra.mxu1 %v579_v48  ;;  %581 = vmatprep.subr.bf16.mxu0 %v620_v9 }
  0x20   :  { %591 = vmatprep.subr.bf16.mxu1 %v620_v9 }
  0x21   :  { %105 = vrot.lane.b32.xlu1 %v95_v28, %s618_s23 }
  0x22   :  { %103 = vrot.lane.b32.xlu0 %v94_v29, %s618_s23  ;;  %583 = vmatpush1.bf16.msra.mxu0 %v582_v52 }
  0x23   :  { %600 = vmatpush1.bf16.msra.mxu1 %v582_v52  ;;  %371 = vmatprep.subr.mxu0 %v617_v0 }
  0x24   :  { %592 = vmatprep.subr.mxu1 %v617_v0  ;;  %v171_v0 = vld [vmem:[#allocation2 + $0x2e] sm:$0xff] }
  0x25   :  { %128 = vrot.lane.b32.xlu1 %v119_v33, %s621_s0 }
  0x26   :  { %201 = vrot.lane.b32.xlu0 %v193_v34, %s625_s18  ;;  %550 = vmatpush1.msk.msra.mxu0 %vm335_vm2, %v322_v55 }
  0x27   :  { %601 = vmatpush1.msk.msra.mxu1 %vm335_vm2, %v322_v55 }
  0x29   :  { %226 = vrot.lane.b32.xlu1 %v689_v10, %s626_s26 }
  0x2a   :  { %130 = vrot.lane.b32.xlu0 %v120_v38, %s621_s0 }
  0x2d   :  { %153 = vrot.lane.b32.xlu1 %v144_v42, %s623_s28 }
  0x2e   :  { %57 = vrot.lane.b32.xlu0 %v46_v43, %s619_s24 }
  0x31   :  { %251 = vrot.lane.b32.xlu1 %v695_v12, %s627_s11 }
  0x32   :  { %155 = vrot.lane.b32.xlu0 %v145_v47, %s623_s28 }
  0x35   :  { %82 = vrot.lane.b32.xlu1 %v71_v51, %s622_s25 }
  0x36   :  { %276 = vrot.lane.b32.xlu0 %v704_v14, %s628_s15 }
  0x39   :  { %180 = vrot.lane.b32.xlu1 %v170_v53, %s624_s9 }
  0x3a   :  { %178 = vrot.lane.b32.xlu0 %v169_v54, %s624_s9 }
  0x3d   :  { %203 = vrot.lane.b32.xlu1 %v194_v56, %s625_s18 }
  0x3e   :  { %107 = vrot.lane.b32.xlu0 %v96_v57, %s618_s23 }
  0x41   :  { %132 = vrot.lane.b32.xlu1 %v121_v58, %s621_s0 }
  0x42   :  { %205 = vrot.lane.b32.xlu0 %v195_v59, %s625_s18 }
  0x45   :  { %230 = vrot.lane.b32.xlu1 %v697_v13, %s626_s26 }
  0x46   :  { %228 = vrot.lane.b32.xlu0 %v219_v60, %s626_s26 }
  0x49   :  { %253 = vrot.lane.b32.xlu1 %v244_v61, %s627_s11 }
  0x4a   :  { %157 = vrot.lane.b32.xlu0 %v146_v62, %s623_s28  ;;  %s629_s28 = smov 112  }
  0x4d   :  { %278 = vrot.lane.b32.xlu1 %v269_v63, %s628_s15 }
  0x4e   :  { %255 = vrot.lane.b32.xlu0 %v46_v43, %s627_s11 }
  0x51   :  { %182 = vrot.lane.b32.xlu1 %v171_v0, %s624_s9 }
  0x52   :  { %280 = vrot.lane.b32.xlu0 %v71_v51, %s628_s15 }
  0x55   :  { %232 = vrot.lane.b32.xlu1 %v221_v1, %s626_s26 }
  0x56   :  { %207 = vrot.lane.b32.xlu0 %v196_v2, %s625_s18 }
  0x59   :  { %282 = vrot.lane.b32.xlu1 %v271_v3, %s628_s15 }
  0x5a   :  { %257 = vrot.lane.b32.xlu0 %v246_v4, %s627_s11 }
  0x7f   :  { %v102_v5 = vpop.permute.xlu1 %101 }
  0x80   :  { %v52_v6 = vpop.permute.xlu0 %51 }
  0x81   :  { %64 = vst.msk [vmem:[#allocation3] sm:$0xff] %vm63_vm3, %v52_v6 }
  0x83   :  { %v127_v7 = vpop.permute.xlu1 %126 }
  0x84   :  { %v77_v8 = vpop.permute.xlu0 %76 }
  0x85   :  { %89 = vst.msk [vmem:[#allocation3] sm:$0xff] %vm88_vm4, %v77_v8 }
  0x86   :  { %114 = vst.msk [vmem:[#allocation3] sm:$0xff] %vm113_vm5, %v102_v5 }
  0x87   :  { %139 = vst.msk [vmem:[#allocation3] sm:$0xff] %vm138_vm6, %v127_v7  ;;  %v56_v9 = vpop.permute.xlu1 %55 }
  0x88   :  { %v54_v10 = vpop.permute.xlu0 %53  ;;  %66 = vst.msk [vmem:[#allocation3 + $0x20] sm:$0xff] %vm63_vm3, %v56_v9 }
  0x89   :  { %65 = vst.msk [vmem:[#allocation3 + $0x10] sm:$0xff] %vm63_vm3, %v54_v10 }
  0x8b   :  { %v79_v11 = vpop.permute.xlu1 %78 }
  0x8c   :  { %v152_v12 = vpop.permute.xlu0 %151  ;;  %90 = vst.msk [vmem:[#allocation3 + $0x10] sm:$0xff] %vm88_vm4, %v79_v11 }
  0x8d   :  { %164 = vst.msk [vmem:[#allocation3] sm:$0xff] %vm163_vm7, %v152_v12 }
  0x8f   :  { %v177_v13 = vpop.permute.xlu1 %176 }
  0x90   :  { %v81_v14 = vpop.permute.xlu0 %80  ;;  %189 = vst.msk [vmem:[#allocation3] sm:$0xff] %vm188_vm8, %v177_v13 }
  0x91   :  { %91 = vst.msk [vmem:[#allocation3 + $0x20] sm:$0xff] %vm88_vm4, %v81_v14 }
  0x93   :  { %v106_v15 = vpop.permute.xlu1 %105 }
  0x94   :  { %v104_v16 = vpop.permute.xlu0 %103  ;;  %116 = vst.msk [vmem:[#allocation3 + $0x20] sm:$0xff] %vm113_vm5, %v106_v15 }
  0x95   :  { %115 = vst.msk [vmem:[#allocation3 + $0x10] sm:$0xff] %vm113_vm5, %v104_v16 }
  0x97   :  { %v129_v17 = vpop.permute.xlu1 %128 }
  0x98   :  { %v202_v18 = vpop.permute.xlu0 %201  ;;  %140 = vst.msk [vmem:[#allocation3 + $0x10] sm:$0xff] %vm138_vm6, %v129_v17 }
  0x99   :  { %214 = vst.msk [vmem:[#allocation3] sm:$0xff] %vm213_vm9, %v202_v18 }
  0x9b   :  { %v227_v19 = vpop.permute.xlu1 %226 }
  0x9c   :  { %v131_v20 = vpop.permute.xlu0 %130  ;;  %239 = vst.msk [vmem:[#allocation3] sm:$0xff] %vm238_vm10, %v227_v19 }
  0x9d   :  { %141 = vst.msk [vmem:[#allocation3 + $0x20] sm:$0xff] %vm138_vm6, %v131_v20 }
  0x9f   :  { %v154_v21 = vpop.permute.xlu1 %153 }
  0xa0   :  { %v58_v22 = vpop.permute.xlu0 %57  ;;  %165 = vst.msk [vmem:[#allocation3 + $0x10] sm:$0xff] %vm163_vm7, %v154_v21 }
  0xa1   :  { %67 = vst.msk [vmem:[#allocation3 + $0x30] sm:$0xff] %vm63_vm3, %v58_v22 }
  0xa3   :  { %v252_v23 = vpop.permute.xlu1 %251 }
  0xa4   :  { %v156_v24 = vpop.permute.xlu0 %155  ;;  %264 = vst.msk [vmem:[#allocation3] sm:$0xff] %vm263_vm11, %v252_v23 }
  0xa5   :  { %166 = vst.msk [vmem:[#allocation3 + $0x20] sm:$0xff] %vm163_vm7, %v156_v24 }
  0xa7   :  { %v83_v25 = vpop.permute.xlu1 %82 }
  0xa8   :  { %v277_v26 = vpop.permute.xlu0 %276  ;;  %92 = vst.msk [vmem:[#allocation3 + $0x30] sm:$0xff] %vm88_vm4, %v83_v25 }
  0xa9   :  { %289 = vst.msk [vmem:[#allocation3] sm:$0xff] %vm288_vm12, %v277_v26 }
  0xaa   :  { %291 = vst.msk [vmem:[#allocation3 + $0x8] sm:$0xff] %vm290_vm13, %v277_v26 }
  0xab   :  { %v181_v27 = vpop.permute.xlu1 %180 }
  0xac   :  { %v179_v28 = vpop.permute.xlu0 %178  ;;  %191 = vst.msk [vmem:[#allocation3 + $0x20] sm:$0xff] %vm188_vm8, %v181_v27 }
  0xad   :  { %190 = vst.msk [vmem:[#allocation3 + $0x10] sm:$0xff] %vm188_vm8, %v179_v28 }
  0xaf   :  { %v204_v29 = vpop.permute.xlu1 %203 }
  0xb0   :  { %v108_v30 = vpop.permute.xlu0 %107  ;;  %v298_v32 = vld [vmem:[#allocation3] sm:$0xff]  ;;  %215 = vst.msk [vmem:[#allocation3 + $0x10] sm:$0xff] %vm213_vm9, %v204_v29 }
  0xb1   :  { %v299_v31 = vld [vmem:[#allocation3 + $0x8] sm:$0xff]  ;;  %117 = vst.msk [vmem:[#allocation3 + $0x30] sm:$0xff] %vm113_vm5, %v108_v30 }
  0xb2   :  { %551 = vmatprep.mubr.msk.f32.mxu0 %vm290_vm13, %v299_v31 }
  0xb3   :  { %404 = vmatmul.mubr.f32.vlgmr.msra.gmra.mrb[0].mxu0 %v298_v32  ;;  %v133_v33 = vpop.permute.xlu1 %132 }
  0xb4   :  { %v206_v34 = vpop.permute.xlu0 %205  ;;  %142 = vst.msk [vmem:[#allocation3 + $0x30] sm:$0xff] %vm138_vm6, %v133_v33 }
  0xb5   :  { %216 = vst.msk [vmem:[#allocation3 + $0x20] sm:$0xff] %vm213_vm9, %v206_v34  ;;  %v465_v34 = vlaneseq }
  0xb7   :  { %v231_v35 = vpop.permute.xlu1 %230 }
  0xb8   :  { %v229_v36 = vpop.permute.xlu0 %228  ;;  %241 = vst.msk [vmem:[#allocation3 + $0x20] sm:$0xff] %vm238_vm10, %v231_v35  ;;  %v466_v35 = vshrl.u32 %v465_v34, 7 }
  0xb9   :  { %240 = vst.msk [vmem:[#allocation3 + $0x10] sm:$0xff] %vm238_vm10, %v229_v36  ;;  %v463_v36 = vld [vmem:[%s910_s2] sm:$0x1] }
  0xbb   :  { %v254_v37 = vpop.permute.xlu1 %253 }
  0xbc   :  { %v158_v38 = vpop.permute.xlu0 %157  ;;  %265 = vst.msk [vmem:[#allocation3 + $0x10] sm:$0xff] %vm263_vm11, %v254_v37  ;;  %v467_v37 = vsub.s32 0, %v466_v35 }
  0xbd   :  { %167 = vst.msk [vmem:[#allocation3 + $0x30] sm:$0xff] %vm163_vm7, %v158_v38 }
  0xbf   :  { %v279_v39 = vpop.permute.xlu1 %278 }
  0xc0   :  { %v256_v40 = vpop.permute.xlu0 %255  ;;  %292 = vst.msk [vmem:[#allocation3 + $0x10] sm:$0xff] %vm288_vm12, %v279_v39 }
  0xc1   :  { %293 = vst.msk [vmem:[#allocation3 + $0x18] sm:$0xff] %vm290_vm13, %v279_v39 }
  0xc2   :  { %266 = vst.msk [vmem:[#allocation3 + $0x20] sm:$0xff] %vm263_vm11, %v256_v40 }
  0xc3   :  { %v183_v41 = vpop.permute.xlu1 %182 }
  0xc4   :  { %v281_v42 = vpop.permute.xlu0 %280  ;;  %192 = vst.msk [vmem:[#allocation3 + $0x30] sm:$0xff] %vm188_vm8, %v183_v41  ;;  %v555_v41 = vld [vmem:[%s911_s3] ss:$0 sm:$0xff] }
  0xc5   :  { %294 = vst.msk [vmem:[#allocation3 + $0x20] sm:$0xff] %vm288_vm12, %v281_v42 }
  0xc6   :  { %295 = vst.msk [vmem:[#allocation3 + $0x28] sm:$0xff] %vm290_vm13, %v281_v42 }
  0xc7   :  { %v233_v43 = vpop.permute.xlu1 %232  ;;  %v300_v46 = vld [vmem:[#allocation3 + $0x10] sm:$0xff] }
  0xc8   :  { %v208_v44 = vpop.permute.xlu0 %207  ;;  %v301_v45 = vld [vmem:[#allocation3 + $0x18] sm:$0xff] }
  0xc9   :  { %217 = vst.msk [vmem:[#allocation3 + $0x30] sm:$0xff] %vm213_vm9, %v208_v44  ;;  %552 = vmatprep.mubr.msk.f32.mxu0 %vm290_vm13, %v301_v45 }
  0xca   :  { %242 = vst.msk [vmem:[#allocation3 + $0x30] sm:$0xff] %vm238_vm10, %v233_v43  ;;  %409 = vmatmul.mubr.f32.gmra.mrb[2].mxu0 %v300_v46 }
  0xcb   :  { %v283_v47 = vpop.permute.xlu1 %282 }
  0xcc   :  { %v258_v48 = vpop.permute.xlu0 %257  ;;  %v302_v50 = vld [vmem:[#allocation3 + $0x20] sm:$0xff]  ;;  %297 = vst.msk [vmem:[#allocation3 + $0x38] sm:$0xff] %vm290_vm13, %v283_v47 }
  0xcd   :  { %v303_v49 = vld [vmem:[#allocation3 + $0x28] sm:$0xff]  ;;  %267 = vst.msk [vmem:[#allocation3 + $0x30] sm:$0xff] %vm263_vm11, %v258_v48 }
  0xce   :  { %553 = vmatprep.mubr.msk.f32.mxu1 %vm290_vm13, %v303_v49  ;;  %296 = vst.msk [vmem:[#allocation3 + $0x30] sm:$0xff] %vm288_vm12, %v283_v47 }
  0xcf   :  { %414 = vmatmul.mubr.f32.vlgmr.msra.gmra.mrb[0].mxu1 %v302_v50 }
  0xd3   :  { %v305_v51 = vld [vmem:[#allocation3 + $0x38] sm:$0xff] }
  0xd4   :  { %554 = vmatprep.mubr.msk.f32.mxu1 %vm290_vm13, %v305_v51 }
  0xd5   :  { %v304_v52 = vld [vmem:[#allocation3 + $0x30] sm:$0xff] }
  0xd6   :  { %419 = vmatmul.mubr.f32.gmra.mrb[2].mxu1 %v304_v52 }
 0x186   :  { %v405_v53 = vpop.f32.mrb[0].mxu0 }
 0x187   :  { %v407_v54 = vpop.f32.mrb[1].mxu0  ;;  %v425_v56 = vsel %vm424_vm14, %v405_v53, 0.0 }
 0x19d   :  { %v410_v55 = vpop.f32.mrb[2].mxu0 }
 0x19e   :  { %v426_v57 = vsel %vm424_vm14, %v410_v55, 0.0  ;;  %v412_v58 = vpop.f32.mrb[3].mxu0 }
 0x19f   :  { %v427_v59 = vadd.f32 %v426_v57, %v425_v56 }
 0x1a2   :  { %v415_v60 = vpop.f32.mrb[0].mxu1 }
 0x1a3   :  { %v428_v61 = vsel %vm424_vm14, %v415_v60, 0.0  ;;  %v417_v62 = vpop.f32.mrb[1].mxu1 }
 0x1a4   :  { %v429_v63 = vadd.f32 %v428_v61, %v427_v59 }
 0x1a9   :  { %v420_v0 = vpop.f32.mrb[2].mxu1 }
 0x1aa   :  { %v430_v1 = vsel %vm424_vm14, %v420_v0, 0.0  ;;  %v422_v2 = vpop.f32.mrb[3].mxu1 }
 0x1ab   :  { %v431_v3 = vadd.f32 %v430_v1, %v429_v63 }
 0x1ad   :  { %v432_v4 = vrot.slane %v431_v3, 4 }
 0x1af   :  { %v433_v5 = vadd.f32 %v432_v4, %v431_v3 }
 0x1b1   :  { %v434_v6 = vrot.slane %v433_v5, 2 }
 0x1b3   :  { %v435_v7 = vadd.f32 %v434_v6, %v433_v5 }
 0x1b5   :  { %v436_v8 = vrot.slane %v435_v7, 1 }
 0x1b7   :  { %v437_v9 = vadd.f32 %v436_v8, %v435_v7 }
 0x1b9   :  { %v438_v10 = vmul.f32 0.03125, %v437_v9 }
 0x1bb   :  { %v439_v11 = vsub.f32 %v405_v53, %v438_v10  ;;  %v440_v12 = vsub.f32 %v410_v55, %v438_v10  ;;  %v441_v13 = vsub.f32 %v415_v60, %v438_v10  ;;  %v442_v14 = vsub.f32 %v420_v0, %v438_v10 }
 0x1bd   :  { %v443_v15 = vmul.f32 %v439_v11, %v439_v11  ;;  %v444_v16 = vmul.f32 %v440_v12, %v440_v12  ;;  %v445_v17 = vmul.f32 %v441_v13, %v441_v13  ;;  %v446_v18 = vmul.f32 %v442_v14, %v442_v14 }
 0x1bf   :  { %v447_v19 = vsel %vm424_vm14, %v443_v15, 0.0  ;;  %v448_v20 = vsel %vm424_vm14, %v444_v16, 0.0  ;;  %v450_v22 = vsel %vm424_vm14, %v445_v17, 0.0  ;;  %v452_v24 = vsel %vm424_vm14, %v446_v18, 0.0 }
 0x1c0   :  { %v449_v21 = vadd.f32 %v448_v20, %v447_v19 }
 0x1c2   :  { %v451_v23 = vadd.f32 %v450_v22, %v449_v21 }
 0x1c4   :  { %v453_v25 = vadd.f32 %v452_v24, %v451_v23 }
 0x1c6   :  { %v454_v26 = vrot.slane %v453_v25, 4 }
 0x1c8   :  { %v455_v27 = vadd.f32 %v454_v26, %v453_v25 }
 0x1ca   :  { %v456_v28 = vrot.slane %v455_v27, 2 }
 0x1cc   :  { %v457_v29 = vadd.f32 %v456_v28, %v455_v27 }
 0x1ce   :  { %v458_v30 = vrot.slane %v457_v29, 1 }
 0x1d0   :  { %v459_v31 = vadd.f32 %v458_v30, %v457_v29 }
 0x1d2   :  { %v460_v32 = vmul.f32 0.03125, %v459_v31 }
 0x1d4   :  { %v461_v33 = vadd.f32 1e-05, %v460_v32 }
 0x1d6   :  { %615 = vrsqrt.f32 %v461_v33 }
 0x1e0   :  { %v616_v38 = vpop.eup %615 }
 0x1e1   :  { %v464_v39 = vmul.f32 %v616_v38, %v463_v36 }
 0x1e3   :  { %v468_v40 = vrot.slane %v464_v39, %v467_v37 }
 0x1e5   :  { %v472_v42 = vmul.f32 %v468_v40, %v442_v14  ;;  %v469_v43 = vmul.f32 %v468_v40, %v439_v11  ;;  %v470_v44 = vmul.f32 %v468_v40, %v440_v12  ;;  %v471_v45 = vmul.f32 %v468_v40, %v441_v13 }
 0x1e7   :  { %v480_v46 = vadd.f32 %v555_v41, %v469_v43  ;;  %v481_v48 = vadd.f32 %v555_v41, %v470_v44  ;;  %v482_v50 = vadd.f32 %v555_v41, %v471_v45  ;;  %v483_v52 = vadd.f32 %v555_v41, %v472_v42 }
 0x1e9   :  { %v484_v47 = vmax.f32 %v480_v46, 0.0  ;;  %v485_v49 = vmax.f32 %v481_v48, 0.0  ;;  %v486_v51 = vmax.f32 %v482_v50, 0.0  ;;  %v487_v53 = vmax.f32 %v483_v52, 0.0 }
 0x1eb   :  { %488 = vxpose.xlu0.b32.start [1/4] (short) (narrow) %v484_v47, 32 }
 0x1ef   :  { %489 = vxpose.xlu0.b32.cont [2/4] (short) (narrow) %v485_v49, 32 }
 0x1f3   :  { %490 = vxpose.xlu0.b32.cont [3/4] (short) (narrow) %v486_v51, 32 }
 0x1f7   :  { %491 = vxpose.xlu0.b32.end [4/4] (short) (narrow) %v487_v53, 32 }
 0x26b   :  { %v504_v54 = vpop.trf.xlu0 }
 0x26c   :  { %521 = vst.msk [vmem:[%s912_s4] sm:$0xff] %vm520_vm15, %v504_v54  ;;  %529 = vrot.lane.b32.xlu1 %v504_v54, %s629_s28 }
 0x26f   :  { %v505_v55 = vpop.trf.xlu0 }
 0x270   :  { %522 = vst.msk [vmem:[%s912_s4 + $0x8] sm:$0xff] %vm520_vm15, %v505_v55  ;;  %531 = vrot.lane.b32.xlu1 %v505_v55, %s629_s28 }
 0x273   :  { %v506_v56 = vpop.trf.xlu0 }
 0x274   :  { %523 = vst.msk [vmem:[%s912_s4 + $0x10] sm:$0xff] %vm520_vm15, %v506_v56  ;;  %533 = vrot.lane.b32.xlu1 %v506_v56, %s629_s28 }
 0x277   :  { %v507_v57 = vpop.trf.xlu0 }
 0x278   :  { %524 = vst.msk [vmem:[%s912_s4 + $0x18] sm:$0xff] %vm520_vm15, %v507_v57  ;;  %535 = vrot.lane.b32.xlu1 %v507_v57, %s629_s28 }
 0x2de   :  { %v530_v58 = vpop.permute.xlu1 %529 }
 0x2df   :  { %556 = vst.msk [vmem:[%s912_s4 + $0x20] sm:$0xff] %vm520_vm15, %v530_v58 }
 0x2e2   :  { %v532_v59 = vpop.permute.xlu1 %531 }
 0x2e3   :  { %557 = vst.msk [vmem:[%s912_s4 + $0x28] sm:$0xff] %vm520_vm15, %v532_v59 }
 0x2e6   :  { %v534_v60 = vpop.permute.xlu1 %533 }
 0x2e7   :  { %558 = vst.msk [vmem:[%s912_s4 + $0x30] sm:$0xff] %vm520_vm15, %v534_v60 }
 0x2ea   :  { %v536_v61 = vpop.permute.xlu1 %535 }
 0x2eb   :  { %559 = vst.msk [vmem:[%s912_s4 + $0x38] sm:$0xff] %vm520_vm15, %v536_v61 }

</bundles_post_ra>
